<compile_context>
chip_gen: v7x
topology: tpu7x:2x2x1
jax: 0.10.0
libtpu: 0.0.40
codegen_flags: <defaults>
</compile_context>

<pallas_src>
import jax
import jax.numpy as jnp
from jax.experimental import pallas as pl
from jax.experimental.pallas import tpu as pltpu

INPUT_SIZE = 2
HIDDEN_SIZE = 2
CLASS_SIZE = 1

_LANES = 128
_SUBLANES = 8


def _mlp_kernel(params_ref, x_ref, o_ref):
    # params_ref : SMEM f32[9] = [w1_00, w1_01, w1_10, w1_11, b1_0, b1_1,
    #                             w2_00, w2_01, b2_0]
    # x_ref : VMEM (INPUT_SIZE, tile_rows, 128)  batch folded on (sublane, lane)
    # o_ref : VMEM (tile_rows, 128)
    w00 = params_ref[0]
    w01 = params_ref[1]
    w10 = params_ref[2]
    w11 = params_ref[3]
    b10 = params_ref[4]
    b11 = params_ref[5]
    v0 = params_ref[6]
    v1 = params_ref[7]
    b2 = params_ref[8]

    x0 = x_ref[0]                      # (tile_rows, 128) f32
    x1 = x_ref[1]                      # (tile_rows, 128) f32

    # Hidden layer: h_j = sigmoid(w1[j,0]*x0 + w1[j,1]*x1 + b1[j])
    # sigmoid(z) = 0.5*(tanh(z/2)+1): one EUP push per sigmoid (vs exp+divide).
    h0 = 0.5 * jnp.tanh(0.5 * (x0 * w00 + x1 * w01 + b10)) + 0.5
    h1 = 0.5 * jnp.tanh(0.5 * (x0 * w10 + x1 * w11 + b11)) + 0.5

    # Output layer: y = sigmoid(w2[0,0]*h0 + w2[0,1]*h1 + b2[0])
    y = 0.5 * jnp.tanh(0.5 * (h0 * v0 + h1 * v1 + b2)) + 0.5

    o_ref[...] = y.astype(o_ref.dtype)


def neural_network_forward(x, w1, b1, w2, b2, *, tile_rows=2048):
    """Forward pass of the NOR NeuralNetwork.

    x  : (B, INPUT_SIZE)            float32
    w1 : (HIDDEN_SIZE, INPUT_SIZE)  float32   (PyTorch Linear layout)
    b1 : (HIDDEN_SIZE,)             float32
    w2 : (CLASS_SIZE, HIDDEN_SIZE)  float32
    b2 : (CLASS_SIZE,)              float32
    returns (B, CLASS_SIZE) float32
    """
    B = x.shape[0]

    # Pack the 9 scalars for SMEM scalar-prefetch:
    # [w1_00, w1_01, w1_10, w1_11, b1_0, b1_1, w2_00, w2_01, b2_0]
    params = jnp.concatenate(
        [w1.reshape(-1), b1.reshape(-1), w2.reshape(-1), b2.reshape(-1)]
    ).astype(jnp.float32)

    # Feature-major, batch folded across (sublane, lane):
    #   (B, 2) -> (2, B) -> pad B to a multiple of 8*128 -> (2, R, 128)
    xt = jnp.transpose(x.astype(jnp.float32))           # (INPUT_SIZE, B)
    chunk = _SUBLANES * _LANES                           # 1024
    bp = pl.cdiv(B, chunk) * chunk
    if bp != B:
        xt = jnp.pad(xt, ((0, 0), (0, bp - B)))
    R = bp // _LANES                                     # multiple of 8
    xt = xt.reshape(INPUT_SIZE, R, _LANES)

    # Tile rows: multiple of 8 sublanes, capped at R; ragged last block is
    # handled by Pallas (masked OOB writes) so no full-tile padding is needed.
    tr = max(_SUBLANES, (int(tile_rows) // _SUBLANES) * _SUBLANES)
    tr = min(tr, R)
    grid = (pl.cdiv(R, tr),)

    out = pl.pallas_call(
        _mlp_kernel,
        out_shape=jax.ShapeDtypeStruct((R, _LANES), jnp.float32),
        grid_spec=pltpu.PrefetchScalarGridSpec(
            num_scalar_prefetch=1,
            grid=grid,
            in_specs=[
                pl.BlockSpec((INPUT_SIZE, tr, _LANES), lambda i, params: (0, i, 0)),
            ],
            out_specs=pl.BlockSpec((tr, _LANES), lambda i, params: (i, 0)),
        ),
        compiler_params=pltpu.CompilerParams(
            dimension_semantics=("parallel",),
            vmem_limit_bytes=48 * 1024 * 1024,
        ),
        cost_estimate=pl.CostEstimate(
            flops=9 * bp,
            transcendentals=3 * bp,
            bytes_accessed=12 * bp,
        ),
    )(params, xt)

    # Back to PyTorch layout (B, CLASS_SIZE), dropping batch padding.
    return out.reshape(bp)[:B].reshape(B, CLASS_SIZE)


def _reference(x, w1, b1, w2, b2):
    h = jax.nn.sigmoid(x @ w1.T + b1)
    return jax.nn.sigmoid(h @ w2.T + b2)


if __name__ == "__main__":
    key = jax.random.PRNGKey(0)
    kx, k1, k2, k3, k4, kx2 = jax.random.split(key, 6)

    # Deterministic PyTorch-style uniform(-1/sqrt(fan_in), +) init.
    bound1 = 1.0 / jnp.sqrt(INPUT_SIZE)
    bound2 = 1.0 / jnp.sqrt(HIDDEN_SIZE)
    w1 = jax.random.uniform(k1, (HIDDEN_SIZE, INPUT_SIZE), jnp.float32, -bound1, bound1)
    b1 = jax.random.uniform(k2, (HIDDEN_SIZE,), jnp.float32, -bound1, bound1)
    w2 = jax.random.uniform(k3, (CLASS_SIZE, HIDDEN_SIZE), jnp.float32, -bound2, bound2)
    b2 = jax.random.uniform(k4, (CLASS_SIZE,), jnp.float32, -bound2, bound2)

    # Small batch consistent with the module (single grid step, padded to 1024).
    B = 8
    x = jax.random.normal(kx, (B, INPUT_SIZE), dtype=jnp.float32)
    out = jax.block_until_ready(neural_network_forward(x, w1, b1, w2, b2))
    ref = _reference(x, w1, b1, w2, b2)
    assert out.shape == (B, CLASS_SIZE)
    assert jnp.allclose(out, ref, atol=1e-5, rtol=1e-5)

    # Multi-step pipelined grid + padding path: B=2000 -> R=16 rows, tile_rows=8
    # -> 2 grid steps with a padded tail.
    B2 = 2000
    x2 = jax.random.normal(kx2, (B2, INPUT_SIZE), dtype=jnp.float32)
    out2 = jax.block_until_ready(
        neural_network_forward(x2, w1, b1, w2, b2, tile_rows=8)
    )
    ref2 = _reference(x2, w1, b1, w2, b2)
    assert out2.shape == (B2, CLASS_SIZE)
    assert jnp.allclose(out2, ref2, atol=1e-5, rtol=1e-5)

    print("KERNEL_OK")
</pallas_src>

<mosaic_0001>
module attributes {stable_mosaic.version = 11 : i64} {
  func.func @_mlp_kernel(%arg0: i32, %arg1: memref<9xf32, #tpu.memory_space<smem>>, %arg2: memref<2x8x128xf32, #tpu.memory_space<vmem>>, %arg3: memref<8x128xf32, #tpu.memory_space<vmem>>) attributes {dimension_semantics = [#tpu.dimension_semantics<parallel>], iteration_bounds = array<i64: 1>, scalar_prefetch = 1 : i64, scratch_operands = 0 : i64, tpu.core_type = #tpu.core_type<tc>, window_params = [{transform_indices = @transform_0, window_bounds = array<i64: 2, 8, 128>}, {transform_indices = @transform_1, window_bounds = array<i64: 8, 128>}]} {
    %c0 = arith.constant 0 : index
    %0 = memref.load %arg1[%c0] : memref<9xf32, #tpu.memory_space<smem>>
    %c1 = arith.constant 1 : index
    %1 = memref.load %arg1[%c1] : memref<9xf32, #tpu.memory_space<smem>>
    %c2 = arith.constant 2 : index
    %2 = memref.load %arg1[%c2] : memref<9xf32, #tpu.memory_space<smem>>
    %c3 = arith.constant 3 : index
    %3 = memref.load %arg1[%c3] : memref<9xf32, #tpu.memory_space<smem>>
    %c4 = arith.constant 4 : index
    %4 = memref.load %arg1[%c4] : memref<9xf32, #tpu.memory_space<smem>>
    %c5 = arith.constant 5 : index
    %5 = memref.load %arg1[%c5] : memref<9xf32, #tpu.memory_space<smem>>
    %c6 = arith.constant 6 : index
    %6 = memref.load %arg1[%c6] : memref<9xf32, #tpu.memory_space<smem>>
    %c7 = arith.constant 7 : index
    %7 = memref.load %arg1[%c7] : memref<9xf32, #tpu.memory_space<smem>>
    %c8 = arith.constant 8 : index
    %8 = memref.load %arg1[%c8] : memref<9xf32, #tpu.memory_space<smem>>
    %c0_0 = arith.constant 0 : index
    %c0_1 = arith.constant 0 : index
    %c0_2 = arith.constant 0 : index
    %9 = vector.load %arg2[%c0_0, %c0_1, %c0_2] : memref<2x8x128xf32, #tpu.memory_space<vmem>>, vector<1x8x128xf32>
    %10 = vector.shape_cast %9 : vector<1x8x128xf32> to vector<8x128xf32>
    %c1_3 = arith.constant 1 : index
    %c0_4 = arith.constant 0 : index
    %c0_5 = arith.constant 0 : index
    %11 = vector.load %arg2[%c1_3, %c0_4, %c0_5] : memref<2x8x128xf32, #tpu.memory_space<vmem>>, vector<1x8x128xf32>
    %12 = vector.shape_cast %11 : vector<1x8x128xf32> to vector<8x128xf32>
    %13 = vector.broadcast %0 : f32 to vector<8x128xf32>
    %14 = arith.mulf %10, %13 : vector<8x128xf32>
    %15 = vector.broadcast %1 : f32 to vector<8x128xf32>
    %16 = arith.mulf %12, %15 : vector<8x128xf32>
    %17 = arith.addf %14, %16 : vector<8x128xf32>
    %18 = vector.broadcast %4 : f32 to vector<8x128xf32>
    %19 = arith.addf %17, %18 : vector<8x128xf32>
    %cst = arith.constant 5.000000e-01 : f32
    %20 = vector.broadcast %cst : f32 to vector<8x128xf32>
    %21 = arith.mulf %20, %19 : vector<8x128xf32>
    %22 = math.tanh %21 : vector<8x128xf32>
    %cst_6 = arith.constant 5.000000e-01 : f32
    %23 = vector.broadcast %cst_6 : f32 to vector<8x128xf32>
    %24 = arith.mulf %23, %22 : vector<8x128xf32>
    %cst_7 = arith.constant 5.000000e-01 : f32
    %25 = vector.broadcast %cst_7 : f32 to vector<8x128xf32>
    %26 = arith.addf %24, %25 : vector<8x128xf32>
    %27 = vector.broadcast %2 : f32 to vector<8x128xf32>
    %28 = arith.mulf %10, %27 : vector<8x128xf32>
    %29 = vector.broadcast %3 : f32 to vector<8x128xf32>
    %30 = arith.mulf %12, %29 : vector<8x128xf32>
    %31 = arith.addf %28, %30 : vector<8x128xf32>
    %32 = vector.broadcast %5 : f32 to vector<8x128xf32>
    %33 = arith.addf %31, %32 : vector<8x128xf32>
    %cst_8 = arith.constant 5.000000e-01 : f32
    %34 = vector.broadcast %cst_8 : f32 to vector<8x128xf32>
    %35 = arith.mulf %34, %33 : vector<8x128xf32>
    %36 = math.tanh %35 : vector<8x128xf32>
    %cst_9 = arith.constant 5.000000e-01 : f32
    %37 = vector.broadcast %cst_9 : f32 to vector<8x128xf32>
    %38 = arith.mulf %37, %36 : vector<8x128xf32>
    %cst_10 = arith.constant 5.000000e-01 : f32
    %39 = vector.broadcast %cst_10 : f32 to vector<8x128xf32>
    %40 = arith.addf %38, %39 : vector<8x128xf32>
    %41 = vector.broadcast %6 : f32 to vector<8x128xf32>
    %42 = arith.mulf %26, %41 : vector<8x128xf32>
    %43 = vector.broadcast %7 : f32 to vector<8x128xf32>
    %44 = arith.mulf %40, %43 : vector<8x128xf32>
    %45 = arith.addf %42, %44 : vector<8x128xf32>
    %46 = vector.broadcast %8 : f32 to vector<8x128xf32>
    %47 = arith.addf %45, %46 : vector<8x128xf32>
    %cst_11 = arith.constant 5.000000e-01 : f32
    %48 = vector.broadcast %cst_11 : f32 to vector<8x128xf32>
    %49 = arith.mulf %48, %47 : vector<8x128xf32>
    %50 = math.tanh %49 : vector<8x128xf32>
    %cst_12 = arith.constant 5.000000e-01 : f32
    %51 = vector.broadcast %cst_12 : f32 to vector<8x128xf32>
    %52 = arith.mulf %51, %50 : vector<8x128xf32>
    %cst_13 = arith.constant 5.000000e-01 : f32
    %53 = vector.broadcast %cst_13 : f32 to vector<8x128xf32>
    %54 = arith.addf %52, %53 : vector<8x128xf32>
    %c0_14 = arith.constant 0 : index
    %c0_15 = arith.constant 0 : index
    %55 = vector.load %arg3[%c0_14, %c0_15] : memref<8x128xf32, #tpu.memory_space<vmem>>, vector<8x128xf32>
    tpu.vector_store %arg3[%c0_14, %c0_15], %54 {strides = array<i32>} : memref<8x128xf32, #tpu.memory_space<vmem>>, vector<8x128xf32>,
    return
  }
  func.func @transform_0(%arg0: i32, %arg1: memref<9xf32, #tpu.memory_space<smem>>) -> (i32, i32, i32) {
    %c0_i32 = arith.constant 0 : i32
    %c0_i32_0 = arith.constant 0 : i32
    %c0_i32_1 = arith.constant 0 : i32
    return %c0_i32, %arg0, %c0_i32_0 : i32, i32, i32
  }
  func.func @transform_1(%arg0: i32, %arg1: memref<9xf32, #tpu.memory_space<smem>>) -> (i32, i32) {
    %c0_i32 = arith.constant 0 : i32
    %c0_i32_0 = arith.constant 0 : i32
    return %arg0, %c0_i32 : i32, i32
  }
}

</mosaic_0001>

<bundles_post_ra>
// kernel: tpu_custom_call.1
= control target key start
LH: loop header
LB: loop body
LE: loop exit
PB: predicated region body
PF: predicated region fallthrough
CT: control target
= control target key end

     0   :  { %s224_s0 = inlined_call_operand.hbm [shape: f32[9], index: 0, kind: input, shape index: {}]   ;;  %s225_s1 = inlined_call_operand.hbm [shape: f32[2,8,128], index: 1, kind: input, shape index: {}]   ;;  %s226_s2 = inlined_call_operand.hbm [shape: f32[8,128], index: 2, kind: output, shape index: {}]  }
   0x1   :  { %s108_s11 = scalar_lea.hbm %s224_s0, 16 }
   0x2   :  { %p109_p0 = scmp.ne.s32.totalorder %s224_s0, %s108_s11  ;;  %p112_p1 = scmp.lt.u32.totalorder %s108_s11, %s224_s0 }
   0x4   :  { %p114_p2 = pnand %p112_p1, %p109_p0 }
   0x6   :  { %117 = shalt.err (!%p114_p2)  }
   0x7   :  { %s168_s16 = smov [#allocation3]  }
   0x8   :  { %8 = dma.hbm_to_smem %s224_s0, 16, %s168_s16, [#allocation2] }
   0x9   :  { %162 = dma.done.wait [#allocation2], 16 }
   0xa   :  { %163 = vsyncadd [#allocation2], 4294967280 }
   0xb   :  { %10 = sfence }
   0xc   :  { %11 = vsyncpa [#allocation5], 0 }
   0xd   :  { %12 = vsyncpa [#allocation6], 0  ;;  %s169_s19 = smov [#allocation4]   ;;  %s118_s23 = scalar_lea.hbm %s225_s1, 256 }
   0xe   :  { %s18_s20 = sshll.u32 %s169_s19, 4  ;;  %p119_p3 = scmp.ne.s32.totalorder %s225_s1, %s118_s23  ;;  %s19_s20 = int_to_ptr.vmem [resolvable:$true] %s18_s20 }
   0xf   :  { %p122_p4 = scmp.lt.u32.totalorder %s118_s23, %s225_s1 }
  0x11   :  { %p124_p5 = pnand %p122_p4, %p119_p3 }
  0x13   :  { %127 = shalt.err (!%p124_p5)
}
  0x14   :  { %s128_s0 = scalar_lea.vmem %s19_s20, 256  ;;  %p133_p7 = scmp.lt.s32.totalorder %s19_s20, %s19_s20 }
  0x15   :  { %p129_p6 = scmp.ne.s32.totalorder %s19_s20, %s128_s0  ;;  %p134_p8 = scmp.lt.s32.totalorder %s128_s0, %s128_s0 }
  0x17   :  { %p135_p9 = por %p134_p8, %p133_p7 }
  0x19   :  { %p136_p10 = pnand %p135_p9, %p129_p6 }
  0x1b   :  { %139 = shalt.err (!%p136_p10)
}
  0x1c   :  { %s170_s28 = smov 128   ;;  %s171_s29 = smov 8  }
  0x1d   :  { %24 = dma.hbm_to_vmem [thread:$0]  %s225_s1, 256, %s19_s20, [#allocation5], %s170_s28, %s170_s28, %s171_s29  }
  0x1e   :  { %164 = dma.done.wait [#allocation5], 256  }
  0x1f   :  { %165 = vsyncadd [#allocation5], 4294967040  ;;  %s28_s4 = sld [smem:[#allocation3]]  ;;  %s89_s5 = sld [smem:[#allocation3 + $0x1]]  ;;  %v37_v0 = vld [vmem:[#allocation4] sm:$0xff]  ;;  %v39_v1 = vld [vmem:[#allocation4 + $0x8] sm:$0xff] }
  0x20   :  { %s90_s6 = sld [smem:[#allocation3 + $0x2]]  ;;  %s91_s7 = sld [smem:[#allocation3 + $0x3]] }
  0x21   :  { %s92_s8 = sld [smem:[#allocation3 + $0x4]]  ;;  %s93_s9 = sld [smem:[#allocation3 + $0x5]] }
  0x22   :  { %s94_s1 = sld [smem:[#allocation3 + $0x6]]  ;;  %s95_s10 = sld [smem:[#allocation3 + $0x7]] }
  0x23   :  { %s96_s11 = sld [smem:[#allocation3 + $0x8]]  ;;  %s172_s12 = smov [#allocation7]  }
  0x24   :  { %s80_s13 = sshll.u32 %s172_s12, 4  ;;  %s81_s13 = int_to_ptr.vmem [resolvable:$true] %s80_s13 }
  0x25   :  { %v40_v2 = vstv %s28_s4  ;;  %v42_v3 = vstv %s89_s5  ;;  %s140_s14 = scalar_lea.vmem %s81_s13, 128  ;;  %p145_p12 = scmp.lt.s32.totalorder %s81_s13, %s81_s13 }
  0x26   :  { %v41_v4 = vmul.f32 %v40_v2, %v37_v0  ;;  %v43_v5 = vmul.f32 %v42_v3, %v39_v1  ;;  %v51_v6 = vstv %s90_s6  ;;  %v53_v7 = vstv %s91_s7  ;;  %p141_p11 = scmp.ne.s32.totalorder %s81_s13, %s140_s14  ;;  %p146_p13 = scmp.lt.s32.totalorder %s140_s14, %s140_s14 }
  0x27   :  { %v45_v8 = vstv %s92_s8  ;;  %v52_v9 = vmul.f32 %v51_v6, %v37_v0  ;;  %v54_v10 = vmul.f32 %v53_v7, %v39_v1  ;;  %v56_v12 = vstv %s93_s9 }
  0x28   :  { %v44_v11 = vadd.f32 %v43_v5, %v41_v4  ;;  %v62_v22 = vstv %s94_s1  ;;  %v64_v24 = vstv %s95_s10  ;;  %p147_p0 = por %p146_p13, %p145_p12 }
  0x29   :  { %v55_v13 = vadd.f32 %v54_v10, %v52_v9  ;;  %v67_v28 = vstv %s96_s11 }
  0x2a   :  { %v46_v14 = vadd.f32 %v45_v8, %v44_v11  ;;  %p148_p1 = pnand %p147_p0, %p141_p11 }
  0x2b   :  { %v57_v15 = vadd.f32 %v56_v12, %v55_v13 }
  0x2c   :  { %v47_v16 = vmul.f32 0.5, %v46_v14 }
  0x2d   :  { %v58_v17 = vmul.f32 0.5, %v57_v15 }
  0x2e   :  { %102 = vtanh.f32 %v47_v16 }
  0x2f   :  { %104 = vtanh.f32 %v58_v17 }
  0x38   :  { %v103_v18 = vpop.eup %102 }
  0x39   :  { %v105_v19 = vpop.eup %104  ;;  %v49_v20 = vmul.f32 0.5, %v103_v18 }
  0x3a   :  { %v60_v21 = vmul.f32 0.5, %v105_v19 }
  0x3b   :  { %v50_v23 = vadd.f32 0.5, %v49_v20 }
  0x3c   :  { %v61_v25 = vadd.f32 0.5, %v60_v21 }
  0x3d   :  { %v63_v26 = vmul.f32 %v62_v22, %v50_v23 }
  0x3e   :  { %v65_v27 = vmul.f32 %v64_v24, %v61_v25 }
  0x40   :  { %v66_v29 = vadd.f32 %v65_v27, %v63_v26 }
  0x42   :  { %v68_v30 = vadd.f32 %v67_v28, %v66_v29 }
  0x44   :  { %v69_v31 = vmul.f32 0.5, %v68_v30 }
  0x46   :  { %106 = vtanh.f32 %v69_v31 }
  0x50   :  { %v107_v32 = vpop.eup %106 }
  0x51   :  { %v71_v33 = vmul.f32 0.5, %v107_v32 }
  0x53   :  { %v72_v34 = vadd.f32 0.5, %v71_v33 }
  0x55   :  { %73 = vst [vmem:[#allocation7] sm:$0xff] %v72_v34 }
  0x56   :  { %151 = shalt.err (!%p148_p1)
}
  0x57   :  { %s152_s17 = scalar_lea.hbm %s226_s2, 128 }
  0x58   :  { %p153_p2 = scmp.ne.s32.totalorder %s226_s2, %s152_s17  ;;  %p156_p3 = scmp.lt.u32.totalorder %s152_s17, %s226_s2 }
  0x5a   :  { %p158_p4 = pnand %p156_p3, %p153_p2 }
  0x5c   :  { %161 = shalt.err (!%p158_p4)
}
  0x5d   :  { %83 = dma.vmem_to_hbm [thread:$0]  %s81_s13, 128, %s226_s2, [#allocation6]  }
  0x5e   :  { %166 = dma.done.wait [#allocation6], 128  }
  0x5f   :  { %167 = vsyncadd [#allocation6], 4294967168 }
  0x60   :  { %87 = vsyncpa [#allocation5], 1 }
  0x61   :  { %88 = vsyncpa [#allocation6], 1 }

</bundles_post_ra>
